<compile_context>
chip_gen: v5e
topology: v5e:2x2
jax: 0.10.0
libtpu: 0.0.40
codegen_flags: <defaults>
</compile_context>

<pallas_src>
import math

import jax
import jax.numpy as jnp
from jax.experimental import pallas as pl
from jax.experimental.pallas import tpu as pltpu


# ---------------------------------------------------------------------------
# Kernels
# ---------------------------------------------------------------------------
def make_proj_kernel(inv_scale: float):
    """Q/K/V projections for one (ts, D) sequence tile. Q is pre-scaled."""

    def kernel(xq_ref, xk_ref, xv_ref,
               wq_ref, bq_ref, wk_ref, bk_ref, wv_ref, bv_ref,
               q_ref, k_ref, v_ref):
        xq = xq_ref[...].astype(jnp.bfloat16)
        xk = xk_ref[...].astype(jnp.bfloat16)
        xv = xv_ref[...].astype(jnp.bfloat16)
        # bf16 MXU inputs, f32 accumulation; biases stay f32.
        q = jnp.dot(xq, wq_ref[...], preferred_element_type=jnp.float32) + bq_ref[...]
        k = jnp.dot(xk, wk_ref[...], preferred_element_type=jnp.float32) + bk_ref[...]
        v = jnp.dot(xv, wv_ref[...], preferred_element_type=jnp.float32) + bv_ref[...]
        q_ref[...] = (q * inv_scale).astype(q_ref.dtype)   # fold 1/sqrt(d_model)
        k_ref[...] = k.astype(k_ref.dtype)
        v_ref[...] = v.astype(v_ref.dtype)

    return kernel


def make_flash_kernel(num_heads: int, d_model: int, tq: int):
    """Head-major flash attention + fused output projection."""

    def kernel(q_ref, k_ref, v_ref, wo_ref, bo_ref, o_ref,
               m_ref, l_ref, acc_ref):
        kv = pl.program_id(2)

        @pl.when(kv == 0)
        def _init():
            m_ref[...] = jnp.full_like(m_ref, -jnp.inf)
            l_ref[...] = jnp.zeros_like(l_ref)
            acc_ref[...] = jnp.zeros_like(acc_ref)

        # TODO(synk): optional attention-mask path (masked_fill with -10000.0)
        # not wired up; this forward matches the mask=None call path.

        q = q_ref[...]                       # (H, tq, d_k) bf16, pre-scaled
        k = k_ref[...]                       # (H, tk, d_k) bf16
        v = v_ref[...]                       # (H, tk, d_k) bf16

        # Batched over heads on the MXU; contraction over d_k (no K transpose).
        s = jnp.einsum("hqd,hkd->hqk", q, k,
                       preferred_element_type=jnp.float32)   # (H, tq, tk) f32

        m_prev = m_ref[...]                                   # (H, tq, 1)
        m_new = jnp.maximum(m_prev, jnp.max(s, axis=-1, keepdims=True))
        alpha = jnp.exp(m_prev - m_new)
        p = jnp.exp(s - m_new)                                # (H, tq, tk) f32

        l_ref[...] = alpha * l_ref[...] + jnp.sum(p, axis=-1, keepdims=True)
        m_ref[...] = m_new

        pv = jnp.einsum("hqk,hkd->hqd", p.astype(jnp.bfloat16), v,
                        preferred_element_type=jnp.float32)   # (H, tq, d_k)
        acc_ref[...] = alpha * acc_ref[...] + pv               # lane-dense RMW

        @pl.when(kv == pl.num_programs(2) - 1)
        def _finalize():
            inv_l = pl.reciprocal(l_ref[...], approx=True)     # EUP, ~free
            ctx = (acc_ref[...] * inv_l).astype(jnp.bfloat16)  # (H, tq, d_k)
            out = jnp.zeros((tq, d_model), jnp.float32)
            for h in range(num_heads):                         # lane-dense (tq, D)
                out = out + jnp.dot(ctx[h], wo_ref[h],
                                    preferred_element_type=jnp.float32)
            o_ref[...] = (out + bo_ref[...]).astype(o_ref.dtype)

    return kernel


# ---------------------------------------------------------------------------
# Wrapper
# ---------------------------------------------------------------------------
def _pick_tile(s: int, target: int) -> int:
    """Largest multiple-of-8 divisor of s that is <= target (else s itself)."""
    if s <= target:
        return s
    for t in range(target, 7, -1):
        if t % 8 == 0 and s % t == 0:
            return t
    return s


def _tpu_defaults():
    """Generation-aware (q_tile, kv_tile, vmem_limit_bytes)."""
    cap = 64 * 1024 * 1024
    try:
        cap = int(getattr(pltpu.get_tpu_info(), "vmem_capacity_bytes", cap))
    except Exception:
        pass
    kind = ""
    try:
        kind = jax.devices()[0].device_kind.lower()
    except Exception:
        pass
    # Leave headroom for compiler-internal scratch / DMA buffers.
    vmem_limit = int(min(max(cap - 12 * 1024 * 1024, 16 * 1024 * 1024),
                         100 * 1024 * 1024))
    if "v5 lite" in kind or "v5e" in kind:
        q_t, kv_t = 128, 128            # 4x128x128 MXU already saturated
    elif cap >= 100 * 1024 * 1024:
        q_t, kv_t = 256, 512            # v6e-class: 128 MiB VMEM, 256x256 MXU
    else:
        q_t, kv_t = 128, 256            # v7x-class: 64 MiB VMEM
    return q_t, kv_t, vmem_limit


def multi_head_attention(query, key, value, params, *, num_heads: int,
                         q_tile: int | None = None, kv_tile: int | None = None):
    """query/key/value: (B, S, D) f32.  params: weights (D, D), biases (1, D)."""
    B, S, D = query.shape
    assert D % num_heads == 0
    H = num_heads
    d_k = D // H
    inv_scale = 1.0 / math.sqrt(D)      # module scales by 1/sqrt(d_model)

    q_t_def, kv_t_def, vmem_limit = _tpu_defaults()
    tq = _pick_tile(S, q_tile or q_t_def)
    tk = _pick_tile(S, kv_tile or kv_t_def)
    ts = _pick_tile(S, 256)
    nq, nkv, ns = S // tq, S // tk, S // ts

    # bf16 weights in the wrapper (half the VMEM residency / HBM DMA, MXU fast
    # path on v5e/v6e/v7x); biases stay f32.  Wo is pre-split head-major so the
    # output projection is H lane-dense (d_k, D) slabs.
    wq = params["wq"].astype(jnp.bfloat16)
    wk = params["wk"].astype(jnp.bfloat16)
    wv = params["wv"].astype(jnp.bfloat16)
    wo = params["wo"].astype(jnp.bfloat16).reshape(H, d_k, D)
    bq, bk, bv, bo = params["bq"], params["bk"], params["bv"], params["bo"]

    # ---- 1) projections (once over the sequence) ---------------------------
    x_spec = pl.BlockSpec((None, ts, D), lambda b, si: (b, si, 0))
    w_spec = pl.BlockSpec((D, D), lambda *_: (0, 0), pipeline_mode=pl.Buffered(1))
    b_spec = pl.BlockSpec((1, D), lambda *_: (0, 0), pipeline_mode=pl.Buffered(1))
    proj_out = pl.BlockSpec((None, ts, D), lambda b, si: (b, si, 0))

    proj_flops = int(3 * 2 * B * S * D * D)
    proj_bytes = int(3 * B * S * D * (4 + 2) + 3 * (D * D * 2 + D * 4))

    q_p, k_p, v_p = pl.pallas_call(
        make_proj_kernel(inv_scale),
        out_shape=(jax.ShapeDtypeStruct((B, S, D), jnp.bfloat16),) * 3,
        grid_spec=pltpu.PrefetchScalarGridSpec(
            num_scalar_prefetch=0,
            grid=(B, ns),
            in_specs=[x_spec, x_spec, x_spec,
                      w_spec, b_spec,     # Wq, bq
                      w_spec, b_spec,     # Wk, bk
                      w_spec, b_spec],    # Wv, bv
            out_specs=[proj_out, proj_out, proj_out]),
        compiler_params=pltpu.CompilerParams(
            dimension_semantics=("parallel", "parallel"),
            vmem_limit_bytes=vmem_limit),
        cost_estimate=pl.CostEstimate(
            flops=proj_flops, transcendentals=0, bytes_accessed=proj_bytes),
    )(query, key, value, wq, bq, wk, bk, wv, bv)

    # ---- 2) head-major relayout (cheap XLA copy, once) ----------------------
    def to_heads(x):
        return x.reshape(B, S, H, d_k).transpose(0, 2, 1, 3)   # (B, H, S, d_k)
    q_h, k_h, v_h = to_heads(q_p), to_heads(k_p), to_heads(v_p)

    # ---- 3) flash attention + fused output projection -----------------------
    q_spec = pl.BlockSpec((None, H, tq, d_k), lambda b, qi, kv: (b, 0, qi, 0))
    kv_spec = pl.BlockSpec((None, H, tk, d_k), lambda b, qi, kv: (b, 0, kv, 0))
    wo_spec = pl.BlockSpec((H, d_k, D), lambda *_: (0, 0, 0),
                           pipeline_mode=pl.Buffered(1))
    bo_spec = pl.BlockSpec((1, D), lambda *_: (0, 0),
                           pipeline_mode=pl.Buffered(1))
    out_spec = pl.BlockSpec((None, tq, D), lambda b, qi, kv: (b, qi, 0))

    flash_flops = int(B * (4 * S * S * D + 2 * S * D * D))
    flash_trans = int(B * H * S * S)
    flash_bytes = int(B * S * D * 2               # Q read once per query tile
                      + 2 * nq * B * S * D * 2    # K, V re-streamed per q tile
                      + B * S * D * 4             # f32 output
                      + D * D * 2 + D * 4)        # Wo, bo

    return pl.pallas_call(
        make_flash_kernel(H, D, tq),
        out_shape=jax.ShapeDtypeStruct((B, S, D), query.dtype),
        grid_spec=pltpu.PrefetchScalarGridSpec(
            num_scalar_prefetch=0,
            grid=(B, nq, nkv),
            in_specs=[q_spec, kv_spec, kv_spec, wo_spec, bo_spec],
            out_specs=out_spec,
            scratch_shapes=[
                pltpu.VMEM((H, tq, 1), jnp.float32),     # running max
                pltpu.VMEM((H, tq, 1), jnp.float32),     # running denominator
                pltpu.VMEM((H, tq, d_k), jnp.float32),   # context accumulator
            ]),
        compiler_params=pltpu.CompilerParams(
            dimension_semantics=("parallel", "parallel", "arbitrary"),
            vmem_limit_bytes=vmem_limit),
        cost_estimate=pl.CostEstimate(
            flops=flash_flops, transcendentals=flash_trans,
            bytes_accessed=flash_bytes),
    )(q_h, k_h, v_h, wo, bo)


# ---------------------------------------------------------------------------
# Pure-JAX reference (matches the PyTorch module semantics)
# ---------------------------------------------------------------------------
def reference_mha(query, key, value, params, *, num_heads: int):
    B, S, D = query.shape
    d_k = D // num_heads

    def lin(x, w, b):
        return x @ w + b

    Q = lin(query, params["wq"], params["bq"])
    K = lin(key, params["wk"], params["bk"])
    V = lin(value, params["wv"], params["bv"])

    Qh = Q.reshape(B, S, num_heads, d_k).transpose(0, 2, 1, 3)   # (B,H,S,dk)
    Kh = K.reshape(B, S, num_heads, d_k).transpose(0, 2, 1, 3)
    Vh = V.reshape(B, S, num_heads, d_k).transpose(0, 2, 1, 3)

    energy = jnp.einsum("bhqd,bhkd->bhqk", Qh, Kh) / math.sqrt(D)
    attn = jax.nn.softmax(energy, axis=-1)
    ctx = jnp.einsum("bhqk,bhkd->bhqd", attn, Vh)
    ctx = ctx.transpose(0, 2, 1, 3).reshape(B, S, D)
    return lin(ctx, params["wo"], params["bo"])


if __name__ == "__main__":
    B, S, D, H = 2, 8, 32, 4   # batch, seq_len, d_model, num_heads

    key0 = jax.random.PRNGKey(0)
    keys = jax.random.split(key0, 16)

    def w(k):
        return jax.random.normal(k, (D, D), dtype=jnp.float32) * 0.05

    def bias(k):
        return jax.random.normal(k, (1, D), dtype=jnp.float32) * 0.01

    params = {
        "wq": w(keys[0]), "bq": bias(keys[1]),
        "wk": w(keys[2]), "bk": bias(keys[3]),
        "wv": w(keys[4]), "bv": bias(keys[5]),
        "wo": w(keys[6]), "bo": bias(keys[7]),
    }

    query = jax.random.normal(keys[8], (B, S, D), dtype=jnp.float32)
    key_in = jax.random.normal(keys[9], (B, S, D), dtype=jnp.float32)
    value = jax.random.normal(keys[10], (B, S, D), dtype=jnp.float32)

    out = multi_head_attention(query, key_in, value, params, num_heads=H)
    out = jax.block_until_ready(out)

    ref = reference_mha(query, key_in, value, params, num_heads=H)
    assert out.shape == (B, S, D)
    assert jnp.allclose(out, ref, rtol=2e-2, atol=2e-2), "mismatch vs reference"

    print("KERNEL_OK")
</pallas_src>

<mosaic_0001>
module attributes {stable_mosaic.version = 11 : i64} {
  func.func @kernel(%arg0: i32, %arg1: i32, %arg2: memref<1x8x32xf32, #tpu.memory_space<vmem>>, %arg3: memref<1x8x32xf32, #tpu.memory_space<vmem>>, %arg4: memref<1x8x32xf32, #tpu.memory_space<vmem>>, %arg5: memref<32x32xbf16, #tpu.memory_space<vmem>>, %arg6: memref<1x32xf32, #tpu.memory_space<vmem>>, %arg7: memref<32x32xbf16, #tpu.memory_space<vmem>>, %arg8: memref<1x32xf32, #tpu.memory_space<vmem>>, %arg9: memref<32x32xbf16, #tpu.memory_space<vmem>>, %arg10: memref<1x32xf32, #tpu.memory_space<vmem>>, %arg11: memref<1x8x32xbf16, #tpu.memory_space<vmem>>, %arg12: memref<1x8x32xbf16, #tpu.memory_space<vmem>>, %arg13: memref<1x8x32xbf16, #tpu.memory_space<vmem>>) attributes {dimension_semantics = [#tpu.dimension_semantics<parallel>, #tpu.dimension_semantics<parallel>], iteration_bounds = array<i64: 2, 1>, scalar_prefetch = 0 : i64, scratch_operands = 0 : i64, tpu.core_type = #tpu.core_type<tc>, window_params = [{transform_indices = @transform_0, window_bounds = array<i64: 1, 8, 32>}, {transform_indices = @transform_1, window_bounds = array<i64: 1, 8, 32>}, {transform_indices = @transform_2, window_bounds = array<i64: 1, 8, 32>}, {pipeline_mode = #tpu.pipeline_mode<synchronous>, transform_indices = @transform_3, window_bounds = array<i64: 32, 32>}, {pipeline_mode = #tpu.pipeline_mode<synchronous>, transform_indices = @transform_4, window_bounds = array<i64: 1, 32>}, {pipeline_mode = #tpu.pipeline_mode<synchronous>, transform_indices = @transform_5, window_bounds = array<i64: 32, 32>}, {pipeline_mode = #tpu.pipeline_mode<synchronous>, transform_indices = @transform_6, window_bounds = array<i64: 1, 32>}, {pipeline_mode = #tpu.pipeline_mode<synchronous>, transform_indices = @transform_7, window_bounds = array<i64: 32, 32>}, {pipeline_mode = #tpu.pipeline_mode<synchronous>, transform_indices = @transform_8, window_bounds = array<i64: 1, 32>}, {transform_indices = @transform_9, window_bounds = array<i64: 1, 8, 32>}, {transform_indices = @transform_10, window_bounds = array<i64: 1, 8, 32>}, {transform_indices = @transform_11, window_bounds = array<i64: 1, 8, 32>}]} {
    %c0 = arith.constant 0 : index
    %c0_0 = arith.constant 0 : index
    %c0_1 = arith.constant 0 : index
    %0 = vector.load %arg2[%c0, %c0_0, %c0_1] : memref<1x8x32xf32, #tpu.memory_space<vmem>>, vector<1x8x32xf32>
    %1 = vector.shape_cast %0 : vector<1x8x32xf32> to vector<8x32xf32>
    %2 = arith.truncf %1 : vector<8x32xf32> to vector<8x32xbf16>
    %c0_2 = arith.constant 0 : index
    %c0_3 = arith.constant 0 : index
    %c0_4 = arith.constant 0 : index
    %3 = vector.load %arg3[%c0_2, %c0_3, %c0_4] : memref<1x8x32xf32, #tpu.memory_space<vmem>>, vector<1x8x32xf32>
    %4 = vector.shape_cast %3 : vector<1x8x32xf32> to vector<8x32xf32>
    %5 = arith.truncf %4 : vector<8x32xf32> to vector<8x32xbf16>
    %c0_5 = arith.constant 0 : index
    %c0_6 = arith.constant 0 : index
    %c0_7 = arith.constant 0 : index
    %6 = vector.load %arg4[%c0_5, %c0_6, %c0_7] : memref<1x8x32xf32, #tpu.memory_space<vmem>>, vector<1x8x32xf32>
    %7 = vector.shape_cast %6 : vector<1x8x32xf32> to vector<8x32xf32>
    %8 = arith.truncf %7 : vector<8x32xf32> to vector<8x32xbf16>
    %c0_8 = arith.constant 0 : index
    %c0_9 = arith.constant 0 : index
    %9 = vector.load %arg5[%c0_8, %c0_9] : memref<32x32xbf16, #tpu.memory_space<vmem>>, vector<32x32xbf16>
    %cst = arith.constant dense<0.000000e+00> : vector<8x32xf32>
    %10 = tpu.matmul %2, %9, %cst {dimension_numbers = #tpu.dot_dimension_numbers<[1], [0], [0], [1], [0, 0, 1, 1], [], []>} : vector<8x32xbf16>, vector<32x32xbf16>, vector<8x32xf32> -> vector<8x32xf32>
    %c0_10 = arith.constant 0 : index
    %c0_11 = arith.constant 0 : index
    %11 = vector.load %arg6[%c0_10, %c0_11] : memref<1x32xf32, #tpu.memory_space<vmem>>, vector<1x32xf32>
    %12 = vector.broadcast %11 : vector<1x32xf32> to vector<8x32xf32>
    %13 = arith.addf %10, %12 : vector<8x32xf32>
    %c0_12 = arith.constant 0 : index
    %c0_13 = arith.constant 0 : index
    %14 = vector.load %arg7[%c0_12, %c0_13] : memref<32x32xbf16, #tpu.memory_space<vmem>>, vector<32x32xbf16>
    %cst_14 = arith.constant dense<0.000000e+00> : vector<8x32xf32>
    %15 = tpu.matmul %5, %14, %cst_14 {dimension_numbers = #tpu.dot_dimension_numbers<[1], [0], [0], [1], [0, 0, 1, 1], [], []>} : vector<8x32xbf16>, vector<32x32xbf16>, vector<8x32xf32> -> vector<8x32xf32>
    %c0_15 = arith.constant 0 : index
    %c0_16 = arith.constant 0 : index
    %16 = vector.load %arg8[%c0_15, %c0_16] : memref<1x32xf32, #tpu.memory_space<vmem>>, vector<1x32xf32>
    %17 = vector.broadcast %16 : vector<1x32xf32> to vector<8x32xf32>
    %18 = arith.addf %15, %17 : vector<8x32xf32>
    %c0_17 = arith.constant 0 : index
    %c0_18 = arith.constant 0 : index
    %19 = vector.load %arg9[%c0_17, %c0_18] : memref<32x32xbf16, #tpu.memory_space<vmem>>, vector<32x32xbf16>
    %cst_19 = arith.constant dense<0.000000e+00> : vector<8x32xf32>
    %20 = tpu.matmul %8, %19, %cst_19 {dimension_numbers = #tpu.dot_dimension_numbers<[1], [0], [0], [1], [0, 0, 1, 1], [], []>} : vector<8x32xbf16>, vector<32x32xbf16>, vector<8x32xf32> -> vector<8x32xf32>
    %c0_20 = arith.constant 0 : index
    %c0_21 = arith.constant 0 : index
    %21 = vector.load %arg10[%c0_20, %c0_21] : memref<1x32xf32, #tpu.memory_space<vmem>>, vector<1x32xf32>
    %22 = vector.broadcast %21 : vector<1x32xf32> to vector<8x32xf32>
    %23 = arith.addf %20, %22 : vector<8x32xf32>
    %cst_22 = arith.constant 0.176776692 : f32
    %24 = vector.broadcast %cst_22 : f32 to vector<8x32xf32>
    %25 = arith.mulf %13, %24 : vector<8x32xf32>
    %26 = arith.truncf %25 : vector<8x32xf32> to vector<8x32xbf16>
    %c0_23 = arith.constant 0 : index
    %c0_24 = arith.constant 0 : index
    %c0_25 = arith.constant 0 : index
    %27 = vector.load %arg11[%c0_23, %c0_24, %c0_25] : memref<1x8x32xbf16, #tpu.memory_space<vmem>>, vector<1x8x32xbf16>
    %28 = vector.shape_cast %27 : vector<1x8x32xbf16> to vector<8x32xbf16>
    %29 = vector.shape_cast %26 : vector<8x32xbf16> to vector<1x8x32xbf16>
    tpu.vector_store %arg11[%c0_23, %c0_24, %c0_25], %29 {strides = array<i32>} : memref<1x8x32xbf16, #tpu.memory_space<vmem>>, vector<1x8x32xbf16>,
    %30 = arith.truncf %18 : vector<8x32xf32> to vector<8x32xbf16>
    %c0_26 = arith.constant 0 : index
    %c0_27 = arith.constant 0 : index
    %c0_28 = arith.constant 0 : index
    %31 = vector.load %arg12[%c0_26, %c0_27, %c0_28] : memref<1x8x32xbf16, #tpu.memory_space<vmem>>, vector<1x8x32xbf16>
    %32 = vector.shape_cast %31 : vector<1x8x32xbf16> to vector<8x32xbf16>
    %33 = vector.shape_cast %30 : vector<8x32xbf16> to vector<1x8x32xbf16>
    tpu.vector_store %arg12[%c0_26, %c0_27, %c0_28], %33 {strides = array<i32>} : memref<1x8x32xbf16, #tpu.memory_space<vmem>>, vector<1x8x32xbf16>,
    %34 = arith.truncf %23 : vector<8x32xf32> to vector<8x32xbf16>
    %c0_29 = arith.constant 0 : index
    %c0_30 = arith.constant 0 : index
    %c0_31 = arith.constant 0 : index
    %35 = vector.load %arg13[%c0_29, %c0_30, %c0_31] : memref<1x8x32xbf16, #tpu.memory_space<vmem>>, vector<1x8x32xbf16>
    %36 = vector.shape_cast %35 : vector<1x8x32xbf16> to vector<8x32xbf16>
    %37 = vector.shape_cast %34 : vector<8x32xbf16> to vector<1x8x32xbf16>
    tpu.vector_store %arg13[%c0_29, %c0_30, %c0_31], %37 {strides = array<i32>} : memref<1x8x32xbf16, #tpu.memory_space<vmem>>, vector<1x8x32xbf16>,
    return
  }
  func.func @transform_0(%arg0: i32, %arg1: i32) -> (i32, i32, i32) {
    %c0_i32 = arith.constant 0 : i32
    %c0_i32_0 = arith.constant 0 : i32
    return %arg0, %arg1, %c0_i32 : i32, i32, i32
  }
  func.func @transform_1(%arg0: i32, %arg1: i32) -> (i32, i32, i32) {
    %c0_i32 = arith.constant 0 : i32
    %c0_i32_0 = arith.constant 0 : i32
    return %arg0, %arg1, %c0_i32 : i32, i32, i32
  }
  func.func @transform_2(%arg0: i32, %arg1: i32) -> (i32, i32, i32) {
    %c0_i32 = arith.constant 0 : i32
    %c0_i32_0 = arith.constant 0 : i32
    return %arg0, %arg1, %c0_i32 : i32, i32, i32
  }
  func.func @transform_3(%arg0: i32, %arg1: i32) -> (i32, i32) {
    %c0_i32 = arith.constant 0 : i32
    %c0_i32_0 = arith.constant 0 : i32
    %c0_i32_1 = arith.constant 0 : i32
    return %c0_i32, %c0_i32_0 : i32, i32
  }
  func.func @transform_4(%arg0: i32, %arg1: i32) -> (i32, i32) {
    %c0_i32 = arith.constant 0 : i32
    %c0_i32_0 = arith.constant 0 : i32
    %c0_i32_1 = arith.constant 0 : i32
    return %c0_i32, %c0_i32_0 : i32, i32
  }
  func.func @transform_5(%arg0: i32, %arg1: i32) -> (i32, i32) {
    %c0_i32 = arith.constant 0 : i32
    %c0_i32_0 = arith.constant 0 : i32
    %c0_i32_1 = arith.constant 0 : i32
    return %c0_i32, %c0_i32_0 : i32, i32
  }
  func.func @transform_6(%arg0: i32, %arg1: i32) -> (i32, i32) {
    %c0_i32 = arith.constant 0 : i32
    %c0_i32_0 = arith.constant 0 : i32
    %c0_i32_1 = arith.constant 0 : i32
    return %c0_i32, %c0_i32_0 : i32, i32
  }
  func.func @transform_7(%arg0: i32, %arg1: i32) -> (i32, i32) {
    %c0_i32 = arith.constant 0 : i32
    %c0_i32_0 = arith.constant 0 : i32
    %c0_i32_1 = arith.constant 0 : i32
    return %c0_i32, %c0_i32_0 : i32, i32
  }
  func.func @transform_8(%arg0: i32, %arg1: i32) -> (i32, i32) {
    %c0_i32 = arith.constant 0 : i32
    %c0_i32_0 = arith.constant 0 : i32
    %c0_i32_1 = arith.constant 0 : i32
    return %c0_i32, %c0_i32_0 : i32, i32
  }
  func.func @transform_9(%arg0: i32, %arg1: i32) -> (i32, i32, i32) {
    %c0_i32 = arith.constant 0 : i32
    %c0_i32_0 = arith.constant 0 : i32
    return %arg0, %arg1, %c0_i32 : i32, i32, i32
  }
  func.func @transform_10(%arg0: i32, %arg1: i32) -> (i32, i32, i32) {
    %c0_i32 = arith.constant 0 : i32
    %c0_i32_0 = arith.constant 0 : i32
    return %arg0, %arg1, %c0_i32 : i32, i32, i32
  }
  func.func @transform_11(%arg0: i32, %arg1: i32) -> (i32, i32, i32) {
    %c0_i32 = arith.constant 0 : i32
    %c0_i32_0 = arith.constant 0 : i32
    return %arg0, %arg1, %c0_i32 : i32, i32, i32
  }
}

</mosaic_0001>

<bundles_post_ra>
// kernel: tpu_custom_call.1
= control target key start
LH: loop header
LB: loop body
LE: loop exit
PB: predicated region body
PF: predicated region fallthrough
CT: control target
= control target key end

     0   :  { %s1854_s0 = inlined_call_operand.hbm [shape: f32[2,8,32], index: 0, kind: input, shape index: {}]   ;;  %s1855_s1 = inlined_call_operand.hbm [shape: f32[2,8,32], index: 1, kind: input, shape index: {}]   ;;  %s1856_s2 = inlined_call_operand.hbm [shape: f32[2,8,32], index: 2, kind: input, shape index: {}]   ;;  %s1857_s3 = inlined_call_operand.hbm [shape: bf16[32,32], index: 3, kind: input, shape index: {}]   ;;  %s1858_s4 = inlined_call_operand.vmem [shape: f32[1,32], index: 4, kind: input, shape index: {}]   ;;  %s1859_s5 = inlined_call_operand.hbm [shape: bf16[32,32], index: 5, kind: input, shape index: {}]   ;;  %s1860_s6 = inlined_call_operand.vmem [shape: f32[1,32], index: 6, kind: input, shape index: {}]   ;;  %s1861_s7 = inlined_call_operand.hbm [shape: bf16[32,32], index: 7, kind: input, shape index: {}]   ;;  %s1862_s8 = inlined_call_operand.vmem [shape: f32[1,32], index: 8, kind: input, shape index: {}]   ;;  %s1863_s9 = inlined_call_operand.hbm [shape: bf16[2,8,32], index: 9, kind: output, shape index: {0}]   ;;  %s1864_s10 = inlined_call_operand.hbm [shape: bf16[2,8,32], index: 10, kind: output, shape index: {1}]   ;;  %s1865_s11 = inlined_call_operand.hbm [shape: bf16[2,8,32], index: 11, kind: output, shape index: {2}]  }
   0x1   :  { %1883 = sst [smem:[#allocation30_spill]] %s1855_s1 }
   0x2   :  { %1884 = sst [smem:[#allocation31_spill]] %s1857_s3 }
   0x3   :  { %1885 = sst [smem:[#allocation32_spill]] %s1859_s5 }
   0x4   :  { %1886 = sst [smem:[#allocation33_spill]] %s1861_s7 }
   0x5   :  { %1887 = sst [smem:[#allocation34_spill]] %s1862_s8 }
   0x6   :  { %1888 = sst [smem:[#allocation35_spill]] %s1863_s9 }
   0x7   :  { %1889 = sst [smem:[#allocation36_spill]] %s1864_s10 }
   0x8   :  { %1890 = sst [smem:[#allocation37_spill]] %s1865_s11 }
   0x9   :  { %17 = vsyncpa [#allocation3], 0 }
   0xa   :  { %19 = vsyncpa [#allocation3 + $0x1], 0 }
   0xb   :  { %20 = vsyncpa [#allocation6], 0 }
   0xc   :  { %22 = vsyncpa [#allocation6 + $0x1], 0 }
   0xd   :  { %23 = vsyncpa [#allocation9], 0 }
   0xe   :  { %24 = vsyncpa [#allocation12], 0 }
   0xf   :  { %25 = vsyncpa [#allocation4], 0 }
  0x10   :  { %27 = vsyncpa [#allocation4 + $0x1], 0 }
  0x11   :  { %28 = vsyncpa [#allocation15], 0 }
  0x12   :  { %30 = vsyncpa [#allocation15 + $0x1], 0  ;;  %s1557_s17 = smov 0   ;;  %s1559_s18 = smov 0  }
  0x13   :  { %s1561_s19 = smov 0   ;;  %s1563_s20 = smov 0  }
  0x14   :  { %s1565_s21 = smov 0   ;;  %s1567_s22 = smov 0  }
  0x15 LB: > { %1891 = sst [smem:[#allocation23_spill]] %s1470_s17  ;;  %s1588_s23 = sadd.s32 4294967295, %s1490_s22   ;;  %s1490_s22 = sphi %s1567_s22, %s36_s22   ;;  %s1486_s21 = sphi %s1565_s21, %s1923_s21   ;;  %s1482_s20 = sphi %s1563_s20, %s1922_s20   ;;  %s1478_s19 = sphi %s1561_s19, %s1926_s19   ;;  %s1474_s18 = sphi %s1559_s18, %s1925_s18   ;;  %s1470_s17 = sphi %s1557_s17, %s1924_s17  }
  0x16   : > { %1892 = sst [smem:[#allocation24_spill]] %s1486_s21  ;;  %p976_p0 = scmp.ge.s32.totalorder %s1490_s22, 1 }
  0x17   : > { %1893 = sst [smem:[#allocation25_spill]] %s1490_s22  ;;  %p71_p1 = scmp.eq.s32.totalorder %s1588_s23, 0 }
  0x18   : > { %p347_p2 = scmp.lt.s32.totalorder %s1490_s22, 3  ;;  %s1894_s3 = sld [smem:[#allocation31_spill]] }
  0x19   : > { %s1492_s28 = smov [#allocation8]   ;;  %p980_p6 = scmp.ge.s32.totalorder %s1490_s22, 2 }
  0x1a   : > { %p1596_p3 = pnand %p976_p0, %p347_p2  ;;  %s360_s29 = sshll.u32 %s1492_s28, 4  ;;  %s361_s29 = int_to_ptr.vmem [resolvable:$true] %s360_s29 }
  0x1b   : > { %s1866_s12 = smov 64   ;;  %s1868_s13 = smov 4  }
  0x1c   : > { %p1062_p4 = pneg %p1596_p3  ;;  %s1871_s14 = sadd.s32 4294967294, %s1490_s22  }
  0x1d   : > { %s48_s15 = sadd.s32 1, %s1486_s21  ;;  %s57_s16 = sadd.s32 1, %s1478_s19 }
  0x1e   : > { %s358_s26 = sshll.u32 %s1894_s3, 4  ;;  %p1604_p5 = pnand %p1062_p4, %p71_p1  ;;  %s359_s26 = int_to_ptr.hbm [resolvable:$true] %s358_s26 }
  0x1f   : > { %p50_p7 = scmp.ge.s32.totalorder %s48_s15, 2  ;;  %p64_p8 = scmp.ne.s32.totalorder %s1478_s19, %s1474_s18 }
  0x20   : > { %1065 = dma.hbm_to_vmem [thread:$0]  (!%p1604_p5), %s359_s26, 256, %s361_s29, [#allocation9], %s1866_s12, %s1866_s12, %s1868_s13  }
  0x21   : > { %p65_p9 = scmp.eq.s32.totalorder %s1490_s22, 0  ;;  %p70_p10 = scmp.ne.s32.totalorder %s1474_s18, %s1470_s17 }
  0x22   : > { %s1928_s15 = smov (%p50_p7, %s48_s15), 0  ;;  %p278_p13 = scmp.eq.s32.totalorder %s1588_s23, 1 }
  0x23   : > { %1897 = sst [smem:[#allocation26_spill]] %s1928_s15  ;;  %p1624_p11 = por %p65_p9, %p64_p8 }
  0x24   : > { %p1630_p12 = por %p71_p1, %p70_p10  ;;  %s52_s26 = ssub.s32 %s1486_s21, %s1928_s15 }
  0x25   : > { %p55_p0 = scmp.eq.s32.totalorder %s52_s26, 0  ;;  %p284_p2 = scmp.eq.s32.totalorder %s1871_s14, 1 }
  0x26   : > { %p1639_p4 = por %p278_p13, %p64_p8  ;;  %p1095_p7 = scmp.lt.s32.totalorder %s1490_s22, 2 }
  0x27   : > { %s1645_s29 = scalar_select %p55_p0, %s1478_s19, %s57_s16  }
  0x28   : > { %s1900_s28 = scalar_select %p1639_p4, 1, 0 }
  0x29   : > { %1902 = sst [smem:[#allocation28_spill]] %s1645_s29  ;;  %p1647_p9 = por %p284_p2, %p70_p10 }
  0x2a   : > { %1901 = sst [smem:[#allocation27_spill]] %s1900_s28  ;;  %s1875_s13 = sand.u32 1, %s1478_s19  }
  0x2b   : > { %s1903_s12 = scalar_select %p1647_p9, 1, 0 }
  0x2c   : > { %s1654_s3 = sshll.u32 %s1875_s13, 3  ;;  %s1657_s15 = sshll.u32 %s1486_s21, 3 }
  0x2d   : > { %1904 = sst [smem:[#allocation29_spill]] %s1903_s12  ;;  %p1661_p8 = pnand %p1095_p7, %p1624_p11 }
  0x2e   : > { %s431_s16 = sand.u32 1, %s1490_s22   ;;  %s1906_s1 = sld [smem:[#allocation30_spill]] }
  0x2f   : > { %s435_s11 = scalar_lea.vmem [#allocation5], %s1654_s3  ;;  %s1671_s24 = scalar_lea.sflag [#allocation6], %s431_s16 }
  0x30   : > { %s444_s13 = sshll.u32 %s435_s11, 4  ;;  %s1907_s5 = sld [smem:[#allocation32_spill]]  ;;  %s445_s13 = int_to_ptr.vmem [resolvable:$true] %s444_s13 }
  0x31   : > { %s1495_s14 = smov [#allocation10]   ;;  %s1908_s7 = sld [smem:[#allocation33_spill]] }
  0x32   : > { %s1909_s16 = smov 4   ;;  %s1910_s28 = smov 64  }
  0x33   : > { %s1496_s8 = smov [#allocation11]   ;;  %s415_s11 = scalar_lea.vmem [#allocation2], %s1654_s3 }
  0x34   : > { %s440_s12 = scalar_lea.hbm %s1906_s1, %s1657_s15  ;;  %s424_s29 = sshll.u32 %s415_s11, 4  ;;  %s425_s29 = int_to_ptr.vmem [resolvable:$true] %s424_s29 }
  0x35   : > { %s442_s17 = sshll.u32 %s440_s12, 4  ;;  %s377_s12 = sshll.u32 %s1495_s14, 4  ;;  %s443_s17 = int_to_ptr.hbm [resolvable:$true] %s442_s17  ;;  %s378_s12 = int_to_ptr.vmem [resolvable:$true] %s377_s12 }
  0x36   : > { %1078 = dma.hbm_to_vmem [thread:$0]  (!%p1661_p8), %s443_s17, 128, %s445_s13, %s1671_s24  }
  0x37   : > { %s375_s22 = sshll.u32 %s1907_s5, 4  ;;  %s392_s1 = sshll.u32 %s1908_s7, 4  ;;  %s376_s22 = int_to_ptr.hbm [resolvable:$true] %s375_s22  ;;  %s393_s1 = int_to_ptr.hbm [resolvable:$true] %s392_s1 }
  0x38   : > { %1068 = dma.hbm_to_vmem [thread:$0]  (!%p1604_p5), %s376_s22, 256, %s378_s12, [#allocation9], %s1910_s28, %s1910_s28, %s1909_s16  }
  0x39   : > { %s394_s17 = sshll.u32 %s1496_s8, 4  ;;  %s420_s14 = scalar_lea.hbm %s1854_s0, %s1657_s15  ;;  %s395_s17 = int_to_ptr.vmem [resolvable:$true] %s394_s17 }
  0x3a   : > { %1071 = dma.hbm_to_vmem [thread:$0]  (!%p1604_p5), %s393_s1, 256, %s395_s17, [#allocation12], %s1910_s28, %s1910_s28, %s1909_s16  }
  0x3b   : > { %s422_s5 = sshll.u32 %s420_s14, 4  ;;  %s1911_s22 = sand.u32 1, %s1478_s19   ;;  %s423_s5 = int_to_ptr.hbm [resolvable:$true] %s422_s5 }
  0x3c   : > { %s412_s12 = scalar_lea.sflag [#allocation3], %s1911_s22  ;;  %s460_s7 = scalar_lea.hbm %s1856_s2, %s1657_s15 }
  0x3d   : > { %1075 = dma.hbm_to_vmem [thread:$0]  (!%p1661_p8), %s423_s5, 128, %s425_s29, %s412_s12  }
  0x3e   : > { %s455_s9 = scalar_lea.vmem [#allocation7], %s1654_s3  ;;  %s462_s1 = sshll.u32 %s460_s7, 4  ;;  %s463_s1 = int_to_ptr.hbm [resolvable:$true] %s462_s1 }
  0x3f   : > { %s464_s10 = sshll.u32 %s455_s9, 4  ;;  %473 = sbr.rel (%p1596_p3) target bundleno = 243 (0xf3), region = 56  ;;  %s465_s10 = int_to_ptr.vmem [resolvable:$true] %s464_s10 }
  0x40   : > { %1081 = dma.hbm_to_vmem [thread:$0]  (!%p1661_p8), %s463_s1, 128, %s465_s10, %s1671_s24  }
  0x41   : > { %s1712_s28 = sand.u32 (!%p1596_p3), 1, %s1474_s18  }
  0x42   : > { %s988_s5 = sshll.u32 (!%p1596_p3), %s1712_s28, 3  ;;  %s476_s16 = scalar_lea.sflag (!%p1596_p3), [#allocation3], %s1712_s28 }
  0x43   : > { %s479_s17 = scalar_lea.vmem (!%p1596_p3), [#allocation2], %s988_s5 }
  0x44   : > { %1445 = dma.done.wait (%p1630_p12), %s476_s16, 128  }
  0x45   : > { %1447 = vsyncadd (%p1630_p12), %s476_s16, 4294967168  ;;  %s485_s3 = sand.u32 1, %s1588_s23   ;;  %s489_s9 = scalar_lea.vmem [#allocation5], %s988_s5 }
  0x46   : > { %s486_s7 = scalar_lea.sflag [#allocation6], %s485_s3 }
  0x47   : > { %1449 = dma.done.wait (%p1630_p12), %s486_s7, 256  }
  0x48   : > { %1451 = vsyncadd (%p1630_p12), %s486_s7, 4294967040  ;;  %s499_s10 = scalar_lea.vmem [#allocation7], %s988_s5 }
  0x49   : > { %1453 = dma.done.wait (%p71_p1), [#allocation9], 512  }
  0x4a   : > { %1455 = vsyncadd (%p71_p1), [#allocation9], 4294966784 }
  0x4b   : > { %1457 = dma.done.wait (%p71_p1), [#allocation12], 256  }
  0x4c   : > { %1459 = vsyncadd (%p71_p1), [#allocation12], 4294967040  ;;  %v1033_v0 = vld [vmem:[#allocation8 + $0x8] sm:$0xff]  ;;  %v1035_v1 = vld [vmem:[#allocation10 + $0x8] sm:$0xff]  ;;  %vm601_vm0 = vcmask 261120   ;;  %s1736_s27 = sshll.u32 %s1712_s28, 2 }
  0x4d   : > { %v1037_v2 = vld [vmem:[#allocation11 + $0x8] sm:$0xff]  ;;  %v1032_v3 = vld [vmem:[#allocation8] sm:$0xff]  ;;  %v1034_v4 = vld [vmem:[#allocation10] sm:$0xff]  ;;  %611 = vmatpush.bf16.msra.mxu0 %v1033_v0  ;;  %647 = vmatpush.bf16.msra.mxu1 %v1035_v1  ;;  %s1739_s15 = sshll.u32 %s1482_s20, 2  ;;  %s1912_s11 = sld [smem:[#allocation36_spill]]  ;;  %vm692_vm1 = vcmask 257024  }
  0x4e   : > { %v1036_v5 = vld [vmem:[#allocation11] sm:$0xff]  ;;  %v575_v6 = vld [vmem:[%s479_s17] sm:$0xff]  ;;  %683 = vmatpush.bf16.msra.mxu2 %v1037_v2  ;;  %s566_s22 = scalar_lea.vmem [#allocation14], %s1736_s27  ;;  %s1913_s8 = sld [smem:[#allocation35_spill]] }
  0x4f   : > { %v577_v7 = vld [vmem:[%s489_s9] sm:$0xff]  ;;  %v579_v8 = vld [vmem:[%s499_s10] sm:$0xff]  ;;  %v576_v9 = vpack.c.bf16 %v575_v6, %v575_v6  ;;  %s1752_s12 = sshll.u32 %s566_s22, 4  ;;  %s559_s16 = scalar_lea.vmem [#allocation13], %s1736_s27  ;;  %s738_s12 = int_to_ptr.vmem [resolvable:$true] %s1752_s12 }
  0x50   : > { %v578_v10 = vpack.c.bf16 %v577_v7, %v577_v7  ;;  %v580_v11 = vpack.c.bf16 %v579_v8, %v579_v8  ;;  %v1153_v12 = vld [vmem:[%s1858_s4] ss:$0 sm:$0xff]  ;;  %s1762_s17 = sshll.u32 %s559_s16, 4  ;;  %s1915_s26 = sld [smem:[#allocation34_spill]]  ;;  %s723_s17 = int_to_ptr.vmem [resolvable:$true] %s1762_s17 }
  0x51   : > { %612 = vmatpush.bf16.msra.mxu0 %v1032_v3  ;;  %648 = vmatpush.bf16.msra.mxu1 %v1034_v4  ;;  %v1154_v13 = vld [vmem:[%s1860_s6] ss:$0 sm:$0xff]  ;;  %s1916_s13 = sld [smem:[#allocation37_spill]] }
  0x52   : > { %684 = vmatpush.bf16.msra.mxu2 %v1036_v5 }
  0x53   : > { %s735_s29 = scalar_lea.hbm %s1912_s11, %s1739_s15  ;;  %s1356_s25 = scalar_lea.hbm %s1912_s11, 8 }
  0x54   : > { %1005 = vmatmul.msk.bf16.vlgmr.msra.gmra.mxu0 %vm601_vm0, %v576_v9  ;;  %1014 = vmatmul.msk.bf16.vlgmr.msra.gmra.mxu1 %vm601_vm0, %v578_v10  ;;  %s720_s1 = scalar_lea.hbm %s1913_s8, %s1739_s15  ;;  %s1758_s5 = sshll.u32 %s735_s29, 4  ;;  %s740_s5 = int_to_ptr.hbm [resolvable:$true] %s1758_s5 }
  0x55   : > { %1023 = vmatmul.msk.bf16.vlgmr.msra.gmra.mxu2 %vm601_vm0, %v580_v11  ;;  %s1764_s9 = sshll.u32 %s720_s1, 4  ;;  %s1779_s29 = scalar_lea.sflag [#allocation15], %s485_s3  ;;  %s725_s9 = int_to_ptr.hbm [resolvable:$true] %s1764_s9 }
  0x56   : > { %v1155_v20 = vld [vmem:[%s1915_s26] ss:$0 sm:$0xff]  ;;  %s1350_s30 = sshra.s32 %s740_s5, 4  ;;  %s1351_s30 = int_to_ptr.hbm [resolvable:$true] %s1350_s30 }
  0x57   : > { %s750_s14 = scalar_lea.hbm %s1916_s13, %s1739_s15  ;;  %s1352_s20 = scalar_lea.hbm %s1351_s30, 4 }
  0x58   : > { %p1353_p1 = scmp.ne.s32.totalorder %s1351_s30, %s1352_s20  ;;  %p1357_p10 = scmp.lt.s32.totalorder %s1351_s30, %s1912_s11 }
  0x59   : > { %p1358_p11 = scmp.lt.s32.totalorder %s1356_s25, %s1352_s20 }
  0x5a   : > { %p1354_p3 = pnand %p1353_p1, %p1639_p4 }
  0x5b   : > { %p1359_p12 = por %p1358_p11, %p1357_p10 }
  0x5c   : > { %p1355_p5 = pneg %p1354_p3 }
  0x5e   : > { %p1360_p13 = pnand %p1359_p12, %p1355_p5 }
  0xd1   : > { %v614_v14 = vpop.f32.mrf.mxu0  ;;  %v650_v15 = vpop.f32.mrf.mxu1 }
  0xd2   : > { %v615_v16 = vadd.f32 %v1153_v12, %v614_v14  ;;  %v651_v17 = vadd.f32 %v1154_v13, %v650_v15 }
  0xd4   : > { %v690_v18 = vmul.f32 0.17677669, %v615_v16  ;;  %v694_v19 = vpack.c.bf16 %v651_v17, %v651_v17 }
  0xd6   : > { %v691_v21 = vpack.c.bf16 %v690_v18, %v690_v18  ;;  %695 = vst.msk [vmem:[%s566_s22] sm:$0xf] %vm692_vm1, %v694_v19 }
  0xd7   : > { %1363 = shalt.err (!%p1360_p13)
}
  0xd8   : > { %1057 = dma.vmem_to_hbm [thread:$0]  (%p1639_p4), %s738_s12, 64, %s740_s5, %s1779_s29   ;;  %v686_v22 = vpop.f32.mrf.mxu2  ;;  %693 = vst.msk [vmem:[%s559_s16] sm:$0xf] %vm692_vm1, %v691_v21 }
  0xd9   : > { %s573_s23 = scalar_lea.vmem [#allocation16], %s1736_s27  ;;  %s1796_s22 = sshll.u32 %s750_s14, 4  ;;  %v687_v23 = vadd.f32 %v1155_v20, %v686_v22  ;;  %v616_v24 = vpop.f32.mrf.mxu0  ;;  %v652_v25 = vpop.f32.mrf.mxu1  ;;  %s755_s22 = int_to_ptr.hbm [resolvable:$true] %s1796_s22 }
  0xda   : > { %s1794_s3 = sshll.u32 %s573_s23, 4  ;;  %s699_s24 = scalar_lea.sflag [#allocation4], %s1712_s28  ;;  %s753_s3 = int_to_ptr.vmem [resolvable:$true] %s1794_s3 }
  0xdb   : > { %s1378_s21 = sshra.s32 %s725_s9, 4  ;;  %s1384_s27 = scalar_lea.hbm %s1913_s8, 8  ;;  %s1379_s21 = int_to_ptr.hbm [resolvable:$true] %s1378_s21 }
  0xdc   : > { %s1380_s30 = scalar_lea.hbm %s1379_s21, 4  ;;  %p1385_p8 = scmp.lt.s32.totalorder %s1379_s21, %s1913_s8 }
  0xdd   : > { %p1381_p0 = scmp.ne.s32.totalorder %s1379_s21, %s1380_s30  ;;  %p1386_p1 = scmp.lt.s32.totalorder %s1384_s27, %s1380_s30 }
  0xdf   : > { %p1382_p2 = pnand %p1381_p0, %p1639_p4  ;;  %p1387_p3 = por %p1386_p1, %p1385_p8 }
  0xe1   : > { %p1383_p7 = pneg %p1382_p2 }
  0xe3   : > { %p1388_p5 = pnand %p1387_p3, %p1383_p7 }
  0xe5   : > { %1391 = shalt.err (!%p1388_p5)
}
  0xe6   : > { %1056 = dma.vmem_to_hbm [thread:$0]  (%p1639_p4), %s723_s17, 64, %s725_s9, %s699_s24   ;;  %v696_v26 = vpack.c.bf16 %v687_v23, %v687_v23 }
  0xe7   : > { %s1406_s28 = sshra.s32 %s755_s22, 4  ;;  %s1412_s25 = scalar_lea.hbm %s1916_s13, 8  ;;  %s1407_s28 = int_to_ptr.hbm [resolvable:$true] %s1406_s28 }
  0xe8   : > { %697 = vst.msk [vmem:[%s573_s23] sm:$0xf] %vm692_vm1, %v696_v26  ;;  %s1408_s14 = scalar_lea.hbm %s1407_s28, 4  ;;  %p1413_p13 = scmp.lt.s32.totalorder %s1407_s28, %s1916_s13 }
  0xe9   : > { %p1409_p10 = scmp.ne.s32.totalorder %s1407_s28, %s1408_s14  ;;  %p1414_p0 = scmp.lt.s32.totalorder %s1412_s25, %s1408_s14 }
  0xeb   : > { %p1410_p11 = pnand %p1409_p10, %p1639_p4  ;;  %p1415_p2 = por %p1414_p0, %p1413_p13 }
  0xed   : > { %p1411_p12 = pneg %p1410_p11 }
  0xef   : > { %p1416_p7 = pnand %p1415_p2, %p1411_p12 }
  0xf1   : > { %1419 = shalt.err (!%p1416_p7)
}
  0xf2   : > { %1058 = dma.vmem_to_hbm [thread:$0]  (%p1639_p4), %s753_s3, 64, %s755_s22, %s1779_s29   ;;  %v688_v27 = vpop.f32.mrf.mxu2 }
  0xf3 PF: > { %s1917_s17 = sld [smem:[#allocation23_spill]]  ;;  %p1083_p8 = pnand %p980_p6, %p1647_p9 }
  0xf4   : > { %s1919_s23 = sld [smem:[#allocation25_spill]] }
  0xf5   : > { %p1084_p1 = pneg %p1083_p8 }
  0xf9   : > { %s766_s24 = sand.u32 1, %s1917_s17  }
  0xfa   : > { %s767_s21 = scalar_lea.sflag [#allocation4], %s766_s24 }
  0xfb   : > { %1461 = dma.done.wait (%p1084_p1), %s767_s21, 64  }
  0xfc   : > { %1463 = vsyncadd (%p1084_p1), %s767_s21, 4294967232  ;;  %s1920_s30 = sadd.s32 4294967294, %s1919_s23  }
  0xfd   : > { %s776_s12 = sand.u32 1, %s1920_s30  }
  0xfe   : > { %s777_s5 = scalar_lea.sflag [#allocation15], %s776_s12 }
  0xff   : > { %1465 = dma.done.wait (%p1084_p1), %s777_s5, 128  }
 0x100   : > { %1467 = vsyncadd (%p1084_p1), %s777_s5, 4294967168  ;;  %s36_s22 = sadd.s32 1, %s1919_s23   ;;  %s1921_s7 = sld [smem:[#allocation28_spill]] }
 0x101   : > { %p33_p4 = scmp.ge.s32.totalorder %s36_s22, 4   ;;  %s1922_s20 = sld [smem:[#allocation24_spill]] }
 0x102   : > { %s1923_s21 = sld [smem:[#allocation26_spill]]  ;;  %s1924_s17 = smov %s1474_s18 }
 0x103   : > { %s1925_s18 = smov %s1478_s19  ;;  %35 = sbr.rel (!%p33_p4) target bundleno = 21 (0x15), region = 169 }
 0x106   : > { %s1926_s19 = smov %s1921_s7 }
 0x108   :  { %793 = vsyncpa [#allocation3], 1 }
 0x109   :  { %795 = vsyncpa [#allocation3 + $0x1], 1 }
 0x10a   :  { %796 = vsyncpa [#allocation6], 1 }
 0x10b   :  { %798 = vsyncpa [#allocation6 + $0x1], 1 }
 0x10c   :  { %799 = vsyncpa [#allocation9], 1 }
 0x10d   :  { %800 = vsyncpa [#allocation12], 1 }
 0x10e   :  { %801 = vsyncpa [#allocation4], 1 }
 0x10f   :  { %803 = vsyncpa [#allocation4 + $0x1], 1 }
 0x110   :  { %804 = vsyncpa [#allocation15], 1 }
 0x111   :  { %806 = vsyncpa [#allocation15 + $0x1], 1 }

</bundles_post_ra>
